<compile_context>
chip_gen: v6e
topology: v6e:2x2x1
jax: 0.10.0
libtpu: 0.0.40
codegen_flags: <defaults>
</compile_context>

<pallas_src>
import jax
import jax.numpy as jnp
from jax.experimental import pallas as pl
from jax.experimental.pallas import tpu as pltpu
import numpy as np


def _transition_kernel(x_ref, scale_ref, shift_ref, w_ref, skip_ref, pool_ref):
    # x_ref:     (4, TILE, C_in)   window-major input
    # scale_ref: (1, C_in)         gamma / sqrt(var + eps)            (f32)
    # shift_ref: (1, C_in)         beta - mean * scale                (f32)
    # w_ref:     (C_in, C_out)     1x1 conv weight with 0.25 avg factor folded in
    # skip_ref:  (4, TILE, C_in)   ReLU(BN(x)), input dtype
    # pool_ref:  (TILE, C_out)     avg-pooled conv output, input dtype
    x = x_ref[...].astype(jnp.float32)                          # (4, T, C)
    s = jnp.maximum(x * scale_ref[...] + shift_ref[...], 0.0)   # BN (inference) + ReLU
    skip_ref[...] = s.astype(skip_ref.dtype)

    # 2x2 avg pool (sum; the 1/4 is folded into w) then 1x1 conv as one channel matmul.
    p = s[0] + s[1] + s[2] + s[3]                               # (T, C)
    pool_ref[...] = jnp.dot(
        p.astype(w_ref.dtype), w_ref[...],
        preferred_element_type=jnp.float32,
    ).astype(pool_ref.dtype)


def transition_with_skip(x_nchw, gamma, beta, running_mean, running_var, conv_w,
                         eps=1e-5, tile=1024):
    N, C, H, W = x_nchw.shape
    assert H % 2 == 0 and W % 2 == 0, "AvgPool2d(2,2) needs even spatial dims"
    Cout = conv_w.shape[0]
    Hh, Wh = H // 2, W // 2
    P = N * Hh * Wh
    in_dtype = x_nchw.dtype

    # --- glue: NCHW -> window-major (4, P, C); a single XLA transpose ---
    x6 = x_nchw.reshape(N, C, Hh, 2, Wh, 2)
    xw = jnp.transpose(x6, (3, 5, 0, 2, 4, 1)).reshape(4, P, C)

    # --- glue: fold BN (inference) into scale/shift; fold 0.25 avg factor into conv weight ---
    scale = (gamma.astype(jnp.float32) /
             jnp.sqrt(running_var.astype(jnp.float32) + eps))
    shift = beta.astype(jnp.float32) - running_mean.astype(jnp.float32) * scale
    scale = scale.reshape(1, C)
    shift = shift.reshape(1, C)
    mm_dtype = in_dtype if in_dtype == jnp.bfloat16 else jnp.float32
    w = (jnp.transpose(conv_w.reshape(Cout, C)) * 0.25).astype(mm_dtype)   # (C_in, C_out)

    # --- tile selection: as big as possible while fitting v7x's 64 MiB VMEM ---
    itm = jnp.dtype(in_dtype).itemsize
    bytes_per_row = (
        2 * (4 * C * itm)          # x block, double-buffered
        + 2 * (4 * C * itm)        # skip block, double-buffered
        + 2 * (Cout * itm)         # pooled block, double-buffered
        + 2 * (4 * C * 4)          # f32 temps: x cast + s
        + (C + Cout) * 4           # f32 temps: pooled sum + matmul result row
    )
    vmem_budget = 32 * 1024 * 1024                 # leave headroom under the 48 MiB limit below
    tile = max(8, min(tile, vmem_budget // max(bytes_per_row, 1)))
    tile = min(tile, P)
    if tile < P:
        tile = max(8, (tile // 8) * 8)             # keep sublane dim a multiple of 8
    grid = (pl.cdiv(P, tile),)                     # ragged last block handled by Pallas masking

    skip_w, pooled = pl.pallas_call(
        _transition_kernel,
        out_shape=(
            jax.ShapeDtypeStruct((4, P, C), in_dtype),
            jax.ShapeDtypeStruct((P, Cout), in_dtype),
        ),
        grid=grid,
        in_specs=[
            pl.BlockSpec((4, tile, C), lambda i: (0, i, 0)),
            pl.BlockSpec((1, C), lambda i: (0, 0)),      # constant block -> stays resident
            pl.BlockSpec((1, C), lambda i: (0, 0)),
            pl.BlockSpec((C, Cout), lambda i: (0, 0)),
        ],
        out_specs=(
            pl.BlockSpec((4, tile, C), lambda i: (0, i, 0)),
            pl.BlockSpec((tile, Cout), lambda i: (i, 0)),
        ),
        compiler_params=pltpu.CompilerParams(
            dimension_semantics=("parallel",),
            vmem_limit_bytes=48 * 1024 * 1024,           # fits v5e/v6e (128 MiB) and v7x (64 MiB)
        ),
    )(xw, scale, shift, w)

    # --- glue: back to NCHW ---
    skip = skip_w.reshape(2, 2, N, Hh, Wh, C)
    skip = jnp.transpose(skip, (2, 5, 3, 0, 4, 1)).reshape(N, C, H, W)

    out = pooled.reshape(N, Hh, Wh, Cout)
    out = jnp.transpose(out, (0, 3, 1, 2))               # (N, C_out, H/2, W/2)
    return out, skip


def _reference(x, gamma, beta, mean, var, conv_w, eps=1e-5):
    inv = gamma / jnp.sqrt(var + eps)
    xn = (x - mean[None, :, None, None]) * inv[None, :, None, None] + beta[None, :, None, None]
    skip = jnp.maximum(xn, 0.0)
    w2 = conv_w[:, :, 0, 0]
    y = jnp.einsum('nchw,oc->nohw', skip, w2)
    N, Co, H, W = y.shape
    p = y.reshape(N, Co, H // 2, 2, W // 2, 2).mean(axis=(3, 5))
    return p, skip


if __name__ == "__main__":
    key = jax.random.PRNGKey(0)
    N, C_in, H, W = 2, 4, 16, 16
    C_out = C_in // 2  # DenseNet transition halves channels

    k1, k2, k3, k4, k5, k6 = jax.random.split(key, 6)
    x = jax.random.normal(k1, (N, C_in, H, W), dtype=jnp.float32)
    gamma = jax.random.normal(k2, (C_in,), dtype=jnp.float32) * 0.1 + 1.0
    beta = jax.random.normal(k3, (C_in,), dtype=jnp.float32) * 0.1
    running_mean = jax.random.normal(k4, (C_in,), dtype=jnp.float32) * 0.1
    running_var = jax.random.uniform(k5, (C_in,), dtype=jnp.float32, minval=0.5, maxval=1.5)
    conv_w = jax.random.normal(k6, (C_out, C_in, 1, 1), dtype=jnp.float32) * 0.1

    out, skip = transition_with_skip(x, gamma, beta, running_mean, running_var, conv_w)
    out, skip = jax.block_until_ready(out), jax.block_until_ready(skip)

    ref_out, ref_skip = _reference(x, gamma, beta, running_mean, running_var, conv_w)
    assert out.shape == (N, C_out, H // 2, W // 2)
    assert skip.shape == (N, C_in, H, W)
    np.testing.assert_allclose(np.asarray(out), np.asarray(ref_out), rtol=1e-5, atol=1e-5)
    np.testing.assert_allclose(np.asarray(skip), np.asarray(ref_skip), rtol=1e-5, atol=1e-5)

    print("KERNEL_OK")
</pallas_src>

<mosaic_0001>
module attributes {stable_mosaic.version = 11 : i64} {
  func.func @_transition_kernel(%arg0: i32, %arg1: memref<4x128x4xf32, #tpu.memory_space<vmem>>, %arg2: memref<1x4xf32, #tpu.memory_space<vmem>>, %arg3: memref<1x4xf32, #tpu.memory_space<vmem>>, %arg4: memref<4x2xf32, #tpu.memory_space<vmem>>, %arg5: memref<4x128x4xf32, #tpu.memory_space<vmem>>, %arg6: memref<128x2xf32, #tpu.memory_space<vmem>>) attributes {dimension_semantics = [#tpu.dimension_semantics<parallel>], iteration_bounds = array<i64: 1>, scalar_prefetch = 0 : i64, scratch_operands = 0 : i64, tpu.core_type = #tpu.core_type<tc>, window_params = [{transform_indices = @transform_0, window_bounds = array<i64: 4, 128, 4>}, {pipeline_mode = #tpu.pipeline_mode<synchronous>, transform_indices = @transform_1, window_bounds = array<i64: 1, 4>}, {pipeline_mode = #tpu.pipeline_mode<synchronous>, transform_indices = @transform_2, window_bounds = array<i64: 1, 4>}, {pipeline_mode = #tpu.pipeline_mode<synchronous>, transform_indices = @transform_3, window_bounds = array<i64: 4, 2>}, {transform_indices = @transform_4, window_bounds = array<i64: 4, 128, 4>}, {transform_indices = @transform_5, window_bounds = array<i64: 128, 2>}]} {
    %c0 = arith.constant 0 : index
    %c0_0 = arith.constant 0 : index
    %c0_1 = arith.constant 0 : index
    %0 = vector.load %arg1[%c0, %c0_0, %c0_1] : memref<4x128x4xf32, #tpu.memory_space<vmem>>, vector<4x128x4xf32>
    %c0_2 = arith.constant 0 : index
    %c0_3 = arith.constant 0 : index
    %1 = vector.load %arg2[%c0_2, %c0_3] : memref<1x4xf32, #tpu.memory_space<vmem>>, vector<1x4xf32>
    %2 = vector.shape_cast %1 : vector<1x4xf32> to vector<1x1x4xf32>
    %3 = vector.broadcast %2 : vector<1x1x4xf32> to vector<4x128x4xf32>
    %4 = arith.mulf %0, %3 : vector<4x128x4xf32>
    %c0_4 = arith.constant 0 : index
    %c0_5 = arith.constant 0 : index
    %5 = vector.load %arg3[%c0_4, %c0_5] : memref<1x4xf32, #tpu.memory_space<vmem>>, vector<1x4xf32>
    %6 = vector.shape_cast %5 : vector<1x4xf32> to vector<1x1x4xf32>
    %7 = vector.broadcast %6 : vector<1x1x4xf32> to vector<4x128x4xf32>
    %8 = arith.addf %4, %7 : vector<4x128x4xf32>
    %cst = arith.constant 0.000000e+00 : f32
    %9 = vector.broadcast %cst : f32 to vector<4x128x4xf32>
    %10 = arith.maximumf %8, %9 : vector<4x128x4xf32>
    %c0_6 = arith.constant 0 : index
    %c0_7 = arith.constant 0 : index
    %c0_8 = arith.constant 0 : index
    %11 = vector.load %arg5[%c0_6, %c0_7, %c0_8] : memref<4x128x4xf32, #tpu.memory_space<vmem>>, vector<4x128x4xf32>
    tpu.vector_store %arg5[%c0_6, %c0_7, %c0_8], %10 {strides = array<i32>} : memref<4x128x4xf32, #tpu.memory_space<vmem>>, vector<4x128x4xf32>,
    %12 = vector.extract_strided_slice %10 {offsets = [0, 0, 0], sizes = [1, 128, 4], strides = [1, 1, 1]} : vector<4x128x4xf32> to vector<1x128x4xf32>
    %13 = vector.shape_cast %12 : vector<1x128x4xf32> to vector<128x4xf32>
    %14 = vector.extract_strided_slice %10 {offsets = [1, 0, 0], sizes = [1, 128, 4], strides = [1, 1, 1]} : vector<4x128x4xf32> to vector<1x128x4xf32>
    %15 = vector.shape_cast %14 : vector<1x128x4xf32> to vector<128x4xf32>
    %16 = arith.addf %13, %15 : vector<128x4xf32>
    %17 = vector.extract_strided_slice %10 {offsets = [2, 0, 0], sizes = [1, 128, 4], strides = [1, 1, 1]} : vector<4x128x4xf32> to vector<1x128x4xf32>
    %18 = vector.shape_cast %17 : vector<1x128x4xf32> to vector<128x4xf32>
    %19 = arith.addf %16, %18 : vector<128x4xf32>
    %20 = vector.extract_strided_slice %10 {offsets = [3, 0, 0], sizes = [1, 128, 4], strides = [1, 1, 1]} : vector<4x128x4xf32> to vector<1x128x4xf32>
    %21 = vector.shape_cast %20 : vector<1x128x4xf32> to vector<128x4xf32>
    %22 = arith.addf %19, %21 : vector<128x4xf32>
    %c0_9 = arith.constant 0 : index
    %c0_10 = arith.constant 0 : index
    %23 = vector.load %arg4[%c0_9, %c0_10] : memref<4x2xf32, #tpu.memory_space<vmem>>, vector<4x2xf32>
    %cst_11 = arith.constant dense<0.000000e+00> : vector<128x2xf32>
    %24 = tpu.matmul %22, %23, %cst_11 {dimension_numbers = #tpu.dot_dimension_numbers<[1], [0], [0], [1], [0, 0, 1, 1], [], []>} : vector<128x4xf32>, vector<4x2xf32>, vector<128x2xf32> -> vector<128x2xf32>
    %c0_12 = arith.constant 0 : index
    %c0_13 = arith.constant 0 : index
    %25 = vector.load %arg6[%c0_12, %c0_13] : memref<128x2xf32, #tpu.memory_space<vmem>>, vector<128x2xf32>
    tpu.vector_store %arg6[%c0_12, %c0_13], %24 {strides = array<i32>} : memref<128x2xf32, #tpu.memory_space<vmem>>, vector<128x2xf32>,
    return
  }
  func.func @transform_0(%arg0: i32) -> (i32, i32, i32) {
    %c0_i32 = arith.constant 0 : i32
    %c0_i32_0 = arith.constant 0 : i32
    %c0_i32_1 = arith.constant 0 : i32
    return %c0_i32, %arg0, %c0_i32_0 : i32, i32, i32
  }
  func.func @transform_1(%arg0: i32) -> (i32, i32) {
    %c0_i32 = arith.constant 0 : i32
    %c0_i32_0 = arith.constant 0 : i32
    %c0_i32_1 = arith.constant 0 : i32
    return %c0_i32, %c0_i32_0 : i32, i32
  }
  func.func @transform_2(%arg0: i32) -> (i32, i32) {
    %c0_i32 = arith.constant 0 : i32
    %c0_i32_0 = arith.constant 0 : i32
    %c0_i32_1 = arith.constant 0 : i32
    return %c0_i32, %c0_i32_0 : i32, i32
  }
  func.func @transform_3(%arg0: i32) -> (i32, i32) {
    %c0_i32 = arith.constant 0 : i32
    %c0_i32_0 = arith.constant 0 : i32
    %c0_i32_1 = arith.constant 0 : i32
    return %c0_i32, %c0_i32_0 : i32, i32
  }
  func.func @transform_4(%arg0: i32) -> (i32, i32, i32) {
    %c0_i32 = arith.constant 0 : i32
    %c0_i32_0 = arith.constant 0 : i32
    %c0_i32_1 = arith.constant 0 : i32
    return %c0_i32, %arg0, %c0_i32_0 : i32, i32, i32
  }
  func.func @transform_5(%arg0: i32) -> (i32, i32) {
    %c0_i32 = arith.constant 0 : i32
    %c0_i32_0 = arith.constant 0 : i32
    return %arg0, %c0_i32 : i32, i32
  }
}

</mosaic_0001>

<bundles_post_ra>
// kernel: tpu_custom_call.1
= control target key start
LH: loop header
LB: loop body
LE: loop exit
PB: predicated region body
PF: predicated region fallthrough
CT: control target
= control target key end

     0   :  { %vm451_vm0 = vcmask 1043456   ;;  %vm289_vm1 = vcmask 31744   ;;  %vm600_vm2 = vcmask 15360   ;;  %s1388_s3 = inlined_call_operand.vmem [shape: f32[4,2], index: 3, kind: input, shape index: {}]   ;;  %s1389_s0 = inlined_call_operand.vmem [shape: f32[4,128,4], index: 0, kind: input, shape index: {}]   ;;  %s1390_s1 = inlined_call_operand.vmem [shape: f32[1,4], index: 1, kind: input, shape index: {}]   ;;  %s1391_s2 = inlined_call_operand.vmem [shape: f32[1,4], index: 2, kind: input, shape index: {}]   ;;  %s1392_s4 = inlined_call_operand.vmem [shape: f32[4,128,4], index: 4, kind: output, shape index: {0}]   ;;  %s1393_s5 = inlined_call_operand.vmem [shape: f32[128,2], index: 5, kind: output, shape index: {1}]  }
   0x1   :  { %v402_v0 = vld [vmem:[%s1388_s3] sm:$0xf]  ;;  %v20_v25 = vld [vmem:[%s1389_s0 + $0x8] sm:$0xff]  ;;  %v21_v61 = vld [vmem:[%s1389_s0 + $0x10] sm:$0xff] }
   0x2   :  { %v19_v1 = vld [vmem:[%s1389_s0] sm:$0xff]  ;;  %661 = vmatprep.subr.msk.mxu0 %vm451_vm0, %v402_v0  ;;  %687 = vmatprep.subr.msk.mxu1 %vm451_vm0, %v402_v0  ;;  %v36_v26 = vld [vmem:[%s1389_s0 + $0x88] sm:$0xff]  ;;  %v37_v62 = vld [vmem:[%s1389_s0 + $0x90] sm:$0xff] }
   0x3   :  { %v35_v2 = vld [vmem:[%s1389_s0 + $0x80] sm:$0xff]  ;;  %662 = vmatpush3.msk.msra.mxu0 %vm451_vm0, %v402_v0  ;;  %688 = vmatpush3.msk.msra.mxu1 %vm451_vm0, %v402_v0  ;;  %v52_v31 = vld [vmem:[%s1389_s0 + $0x108] sm:$0xff]  ;;  %v53_v63 = vld [vmem:[%s1389_s0 + $0x110] sm:$0xff] }
   0x4   :  { %v51_v3 = vld [vmem:[%s1389_s0 + $0x100] sm:$0xff]  ;;  %v68_v32 = vld [vmem:[%s1389_s0 + $0x188] sm:$0xff] }
   0x5   :  { %v67_v4 = vld [vmem:[%s1389_s0 + $0x180] sm:$0xff]  ;;  %v28_v37 = vld [vmem:[%s1389_s0 + $0x48] sm:$0xff] }
   0x6   :  { %v737_v5 = vld [vmem:[%s1390_s1] ss:$0 sm:$0xff]  ;;  %v44_v42 = vld [vmem:[%s1389_s0 + $0xc8] sm:$0xff] }
   0x7   :  { %v90_v6 = vmul.f32 %v737_v5, %v19_v1  ;;  %v106_v7 = vmul.f32 %v737_v5, %v35_v2  ;;  %v122_v8 = vmul.f32 %v737_v5, %v51_v3  ;;  %v745_v9 = vld [vmem:[%s1391_s2] ss:$0 sm:$0xff]  ;;  %v138_v12 = vmul.f32 %v737_v5, %v67_v4  ;;  %v60_v47 = vld [vmem:[%s1389_s0 + $0x148] sm:$0xff] }
   0x8   :  { %v27_v10 = vld [vmem:[%s1389_s0 + $0x40] sm:$0xff]  ;;  %v91_v40 = vmul.f32 %v737_v5, %v20_v25  ;;  %v107_v41 = vmul.f32 %v737_v5, %v36_v26  ;;  %v123_v45 = vmul.f32 %v737_v5, %v52_v31  ;;  %v139_v46 = vmul.f32 %v737_v5, %v68_v32  ;;  %v76_v51 = vld [vmem:[%s1389_s0 + $0x1c8] sm:$0xff]  ;;  %v61_v25 = vld [vmem:[%s1389_s0 + $0x150] sm:$0xff] }
   0x9   :  { %v43_v11 = vld [vmem:[%s1389_s0 + $0xc0] sm:$0xff]  ;;  %v98_v15 = vmul.f32 %v737_v5, %v27_v10  ;;  %v161_v17 = vadd.f32 %v745_v9, %v90_v6  ;;  %v177_v18 = vadd.f32 %v745_v9, %v106_v7  ;;  %v193_v19 = vadd.f32 %v745_v9, %v122_v8  ;;  %v69_v10 = vld [vmem:[%s1389_s0 + $0x190] sm:$0xff] }
   0xa   :  { %v59_v13 = vld [vmem:[%s1389_s0 + $0x140] sm:$0xff]  ;;  %v114_v16 = vmul.f32 %v737_v5, %v43_v11  ;;  %v209_v21 = vadd.f32 %v745_v9, %v138_v12  ;;  %v162_v49 = vadd.f32 %v745_v9, %v91_v40  ;;  %v178_v50 = vadd.f32 %v745_v9, %v107_v41  ;;  %v77_v26 = vld [vmem:[%s1389_s0 + $0x1d0] sm:$0xff]  ;;  %v38_v40 = vld [vmem:[%s1389_s0 + $0x98] sm:$0xff] }
   0xb   :  { %v75_v14 = vld [vmem:[%s1389_s0 + $0x1c0] sm:$0xff]  ;;  %v130_v20 = vmul.f32 %v737_v5, %v59_v13  ;;  %v169_v23 = vadd.f32 %v745_v9, %v98_v15  ;;  %v225_v27 = vmax.f32 %v161_v17, 0.0  ;;  %v241_v28 = vmax.f32 %v177_v18, 0.0  ;;  %v29_v15 = vld [vmem:[%s1389_s0 + $0x50] sm:$0xff] }
   0xc   :  { %v146_v22 = vmul.f32 %v737_v5, %v75_v14  ;;  %v185_v24 = vadd.f32 %v745_v9, %v114_v16  ;;  %v257_v29 = vmax.f32 %v193_v19, 0.0  ;;  %v273_v33 = vmax.f32 %v209_v21, 0.0 }
   0xd   :  { %v201_v30 = vadd.f32 %v745_v9, %v130_v20  ;;  %v233_v35 = vmax.f32 %v169_v23, 0.0  ;;  %290 = vst.msk [vmem:[%s1392_s4] sm:$0xff] %vm289_vm1, %v225_v27  ;;  %306 = vst.msk [vmem:[%s1392_s4 + $0x80] sm:$0xff] %vm289_vm1, %v241_v28  ;;  %v354_v38 = vadd.f32 %v241_v28, %v225_v27  ;;  %v99_v52 = vmul.f32 %v737_v5, %v28_v37  ;;  %v45_v20 = vld [vmem:[%s1389_s0 + $0xd0] sm:$0xff] }
   0xe   :  { %v217_v34 = vadd.f32 %v745_v9, %v146_v22  ;;  %v249_v36 = vmax.f32 %v185_v24, 0.0  ;;  %322 = vst.msk [vmem:[%s1392_s4 + $0x100] sm:$0xff] %vm289_vm1, %v257_v29  ;;  %338 = vst.msk [vmem:[%s1392_s4 + $0x180] sm:$0xff] %vm289_vm1, %v273_v33  ;;  %v194_v54 = vadd.f32 %v745_v9, %v123_v45  ;;  %v210_v55 = vadd.f32 %v745_v9, %v139_v46  ;;  %v54_v45 = vld [vmem:[%s1389_s0 + $0x118] sm:$0xff] }
   0xf   :  { %v265_v39 = vmax.f32 %v201_v30, 0.0  ;;  %298 = vst.msk [vmem:[%s1392_s4 + $0x40] sm:$0xff] %vm289_vm1, %v233_v35  ;;  %v370_v48 = vadd.f32 %v354_v38, %v257_v29  ;;  %v115_v56 = vmul.f32 %v737_v5, %v44_v42  ;;  %v226_v58 = vmax.f32 %v162_v49, 0.0  ;;  %v70_v46 = vld [vmem:[%s1389_s0 + $0x198] sm:$0xff] }
  0x10   :  { %v281_v43 = vmax.f32 %v217_v34, 0.0  ;;  %314 = vst.msk [vmem:[%s1392_s4 + $0xc0] sm:$0xff] %vm289_vm1, %v249_v36  ;;  %v362_v44 = vadd.f32 %v249_v36, %v233_v35  ;;  %v242_v59 = vmax.f32 %v178_v50, 0.0  ;;  %v131_v60 = vmul.f32 %v737_v5, %v60_v47  ;;  %v22_v35 = vld [vmem:[%s1389_s0 + $0x18] sm:$0xff] }
  0x11   :  { %330 = vst.msk [vmem:[%s1392_s4 + $0x140] sm:$0xff] %vm289_vm1, %v265_v39  ;;  %v386_v57 = vadd.f32 %v370_v48, %v273_v33  ;;  %v258_v1 = vmax.f32 %v194_v54, 0.0  ;;  %v274_v2 = vmax.f32 %v210_v55, 0.0  ;;  %v147_v3 = vmul.f32 %v737_v5, %v76_v51  ;;  %291 = vst.msk [vmem:[%s1392_s4 + $0x8] sm:$0xff] %vm289_vm1, %v226_v58  ;;  %v30_v55 = vld [vmem:[%s1389_s0 + $0x58] sm:$0xff] }
  0x12   :  { %346 = vst.msk [vmem:[%s1392_s4 + $0x1c0] sm:$0xff] %vm289_vm1, %v281_v43  ;;  %v378_v53 = vadd.f32 %v362_v44, %v265_v39  ;;  %307 = vst.msk [vmem:[%s1392_s4 + $0x88] sm:$0xff] %vm289_vm1, %v242_v59  ;;  %v355_v4 = vadd.f32 %v242_v59, %v226_v58  ;;  %v170_v6 = vadd.f32 %v745_v9, %v99_v52 }
  0x13   :  { %663 = vmatprep.mubr.msk.f32.mxu0 %vm289_vm1, %v386_v57  ;;  %v186_v7 = vadd.f32 %v745_v9, %v115_v56  ;;  %v202_v8 = vadd.f32 %v745_v9, %v131_v60  ;;  %323 = vst.msk [vmem:[%s1392_s4 + $0x108] sm:$0xff] %vm289_vm1, %v258_v1  ;;  %339 = vst.msk [vmem:[%s1392_s4 + $0x188] sm:$0xff] %vm289_vm1, %v274_v2  ;;  %v218_v11 = vadd.f32 %v745_v9, %v147_v3  ;;  %v46_v56 = vld [vmem:[%s1389_s0 + $0xd8] sm:$0xff] }
  0x14   :  { %v394_v0 = vadd.f32 %v378_v53, %v281_v43  ;;  %v92_v12 = vmul.f32 %v737_v5, %v21_v61  ;;  %v108_v13 = vmul.f32 %v737_v5, %v37_v62  ;;  %v124_v14 = vmul.f32 %v737_v5, %v53_v63  ;;  %v62_v61 = vld [vmem:[%s1389_s0 + $0x158] sm:$0xff] }
  0x15   :  { %v371_v16 = vadd.f32 %v355_v4, %v258_v1  ;;  %v234_v17 = vmax.f32 %v170_v6, 0.0  ;;  %v250_v18 = vmax.f32 %v186_v7, 0.0  ;;  %v266_v19 = vmax.f32 %v202_v8, 0.0 }
  0x16   :  { %675 = vmatprep.mubr.msk.f32.mxu1 %vm289_vm1, %v394_v0  ;;  %v282_v21 = vmax.f32 %v218_v11, 0.0  ;;  %v140_v22 = vmul.f32 %v737_v5, %v69_v10  ;;  %v163_v23 = vadd.f32 %v745_v9, %v92_v12  ;;  %v179_v24 = vadd.f32 %v745_v9, %v108_v13  ;;  %v23_v13 = vld [vmem:[%s1389_s0 + $0x20] sm:$0xff] }
  0x17   :  { %v387_v27 = vadd.f32 %v371_v16, %v274_v2  ;;  %299 = vst.msk [vmem:[%s1392_s4 + $0x48] sm:$0xff] %vm289_vm1, %v234_v17  ;;  %315 = vst.msk [vmem:[%s1392_s4 + $0xc8] sm:$0xff] %vm289_vm1, %v250_v18  ;;  %v363_v28 = vadd.f32 %v250_v18, %v234_v17  ;;  %v195_v29 = vadd.f32 %v745_v9, %v124_v14  ;;  %v78_v2 = vld [vmem:[%s1389_s0 + $0x1d8] sm:$0xff]  ;;  %v39_v14 = vld [vmem:[%s1389_s0 + $0xa0] sm:$0xff] }
  0x18   :  { %331 = vst.msk [vmem:[%s1392_s4 + $0x148] sm:$0xff] %vm289_vm1, %v266_v19  ;;  %v100_v30 = vmul.f32 %v737_v5, %v29_v15  ;;  %347 = vst.msk [vmem:[%s1392_s4 + $0x1c8] sm:$0xff] %vm289_vm1, %v282_v21  ;;  %v211_v31 = vadd.f32 %v745_v9, %v140_v22  ;;  %v227_v32 = vmax.f32 %v163_v23, 0.0  ;;  %v243_v33 = vmax.f32 %v179_v24, 0.0  ;;  %v71_v24 = vld [vmem:[%s1389_s0 + $0x1a0] sm:$0xff] }
  0x19   :  { %v116_v34 = vmul.f32 %v737_v5, %v45_v20  ;;  %664 = vmatmul.mubr.msk.f32.vlgmr.msra.gmra.mxu0 %vm289_vm1, %v387_v27  ;;  %v379_v36 = vadd.f32 %v363_v28, %v266_v19  ;;  %v259_v37 = vmax.f32 %v195_v29, 0.0  ;;  %v132_v38 = vmul.f32 %v737_v5, %v61_v25  ;;  %v55_v19 = vld [vmem:[%s1389_s0 + $0x120] sm:$0xff] }
  0x1a   :  { %v148_v39 = vmul.f32 %v737_v5, %v77_v26  ;;  %v275_v41 = vmax.f32 %v211_v31, 0.0  ;;  %292 = vst.msk [vmem:[%s1392_s4 + $0x10] sm:$0xff] %vm289_vm1, %v227_v32  ;;  %308 = vst.msk [vmem:[%s1392_s4 + $0x90] sm:$0xff] %vm289_vm1, %v243_v33  ;;  %v356_v42 = vadd.f32 %v243_v33, %v227_v32  ;;  %v171_v43 = vadd.f32 %v745_v9, %v100_v30  ;;  %v31_v29 = vld [vmem:[%s1389_s0 + $0x60] sm:$0xff] }
  0x1b   :  { %v187_v44 = vadd.f32 %v745_v9, %v116_v34  ;;  %v395_v47 = vadd.f32 %v379_v36, %v282_v21  ;;  %324 = vst.msk [vmem:[%s1392_s4 + $0x110] sm:$0xff] %vm289_vm1, %v259_v37  ;;  %v203_v48 = vadd.f32 %v745_v9, %v132_v38  ;;  %v93_v50 = vmul.f32 %v737_v5, %v22_v35  ;;  %v47_v34 = vld [vmem:[%s1389_s0 + $0xe0] sm:$0xff] }
  0x1c   :  { %v219_v49 = vadd.f32 %v745_v9, %v148_v39  ;;  %340 = vst.msk [vmem:[%s1392_s4 + $0x190] sm:$0xff] %vm289_vm1, %v275_v41  ;;  %v372_v51 = vadd.f32 %v356_v42, %v259_v37  ;;  %v235_v52 = vmax.f32 %v171_v43, 0.0  ;;  %v109_v54 = vmul.f32 %v737_v5, %v38_v40  ;;  %v63_v39 = vld [vmem:[%s1389_s0 + $0x160] sm:$0xff] }
  0x1d   :  { %v251_v53 = vmax.f32 %v187_v44, 0.0  ;;  %676 = vmatmul.mubr.msk.f32.vlgmr.msra.gmra.mxu1 %vm289_vm1, %v395_v47  ;;  %v267_v57 = vmax.f32 %v203_v48, 0.0  ;;  %v125_v59 = vmul.f32 %v737_v5, %v54_v45  ;;  %v141_v60 = vmul.f32 %v737_v5, %v70_v46  ;;  %v79_v40 = vld [vmem:[%s1389_s0 + $0x1e0] sm:$0xff] }
  0x1e   :  { %v283_v58 = vmax.f32 %v219_v49, 0.0  ;;  %v388_v62 = vadd.f32 %v372_v51, %v275_v41  ;;  %300 = vst.msk [vmem:[%s1392_s4 + $0x50] sm:$0xff] %vm289_vm1, %v235_v52  ;;  %v164_v0 = vadd.f32 %v745_v9, %v93_v50  ;;  %v180_v1 = vadd.f32 %v745_v9, %v109_v54  ;;  %v24_v49 = vld [vmem:[%s1389_s0 + $0x28] sm:$0xff] }
  0x1f   :  { %316 = vst.msk [vmem:[%s1392_s4 + $0xd0] sm:$0xff] %vm289_vm1, %v251_v53  ;;  %v364_v63 = vadd.f32 %v251_v53, %v235_v52  ;;  %332 = vst.msk [vmem:[%s1392_s4 + $0x150] sm:$0xff] %vm289_vm1, %v267_v57  ;;  %v196_v3 = vadd.f32 %v745_v9, %v125_v59  ;;  %v212_v4 = vadd.f32 %v745_v9, %v141_v60  ;;  %v40_v54 = vld [vmem:[%s1389_s0 + $0xa8] sm:$0xff] }
  0x20   :  { %348 = vst.msk [vmem:[%s1392_s4 + $0x1d0] sm:$0xff] %vm289_vm1, %v283_v58  ;;  %v101_v6 = vmul.f32 %v737_v5, %v30_v55  ;;  %v117_v7 = vmul.f32 %v737_v5, %v46_v56  ;;  %666 = vmatprep.mubr.msk.f32.mxu0 %vm289_vm1, %v388_v62  ;;  %v228_v10 = vmax.f32 %v164_v0, 0.0  ;;  %v244_v11 = vmax.f32 %v180_v1, 0.0  ;;  %v56_v59 = vld [vmem:[%s1389_s0 + $0x128] sm:$0xff] }
  0x21   :  { %v380_v8 = vadd.f32 %v364_v63, %v267_v57  ;;  %v133_v12 = vmul.f32 %v737_v5, %v62_v61  ;;  %v260_v15 = vmax.f32 %v196_v3, 0.0  ;;  %v276_v16 = vmax.f32 %v212_v4, 0.0  ;;  %v72_v60 = vld [vmem:[%s1389_s0 + $0x1a8] sm:$0xff] }
  0x22   :  { %v149_v17 = vmul.f32 %v737_v5, %v78_v2  ;;  %v172_v18 = vadd.f32 %v745_v9, %v101_v6  ;;  %293 = vst.msk [vmem:[%s1392_s4 + $0x18] sm:$0xff] %vm289_vm1, %v228_v10  ;;  %309 = vst.msk [vmem:[%s1392_s4 + $0x98] sm:$0xff] %vm289_vm1, %v244_v11  ;;  %v357_v21 = vadd.f32 %v244_v11, %v228_v10  ;;  %v32_v6 = vld [vmem:[%s1389_s0 + $0x68] sm:$0xff] }
  0x23   :  { %v396_v20 = vadd.f32 %v380_v8, %v283_v58  ;;  %v188_v22 = vadd.f32 %v745_v9, %v117_v7  ;;  %v204_v23 = vadd.f32 %v745_v9, %v133_v12  ;;  %325 = vst.msk [vmem:[%s1392_s4 + $0x118] sm:$0xff] %vm289_vm1, %v260_v15  ;;  %341 = vst.msk [vmem:[%s1392_s4 + $0x198] sm:$0xff] %vm289_vm1, %v276_v16  ;;  %v48_v7 = vld [vmem:[%s1389_s0 + $0xe8] sm:$0xff] }
  0x24   :  { %v220_v25 = vadd.f32 %v745_v9, %v149_v17  ;;  %v236_v26 = vmax.f32 %v172_v18, 0.0  ;;  %v94_v27 = vmul.f32 %v737_v5, %v23_v13  ;;  %v110_v28 = vmul.f32 %v737_v5, %v39_v14  ;;  %v64_v13 = vld [vmem:[%s1389_s0 + $0x168] sm:$0xff] }
  0x25   :  { %678 = vmatprep.mubr.msk.f32.mxu1 %vm289_vm1, %v396_v20  ;;  %v373_v30 = vadd.f32 %v357_v21, %v260_v15  ;;  %v252_v31 = vmax.f32 %v188_v22, 0.0  ;;  %v268_v32 = vmax.f32 %v204_v23, 0.0  ;;  %v126_v33 = vmul.f32 %v737_v5, %v55_v19  ;;  %v80_v18 = vld [vmem:[%s1389_s0 + $0x1e8] sm:$0xff] }
  0x26   :  { %v284_v35 = vmax.f32 %v220_v25, 0.0  ;;  %301 = vst.msk [vmem:[%s1392_s4 + $0x58] sm:$0xff] %vm289_vm1, %v236_v26  ;;  %v142_v36 = vmul.f32 %v737_v5, %v71_v24  ;;  %v165_v37 = vadd.f32 %v745_v9, %v94_v27  ;;  %v181_v38 = vadd.f32 %v745_v9, %v110_v28  ;;  %v25_v27 = vld [vmem:[%s1389_s0 + $0x30] sm:$0xff] }
  0x27   :  { %v389_v41 = vadd.f32 %v373_v30, %v276_v16  ;;  %317 = vst.msk [vmem:[%s1392_s4 + $0xd8] sm:$0xff] %vm289_vm1, %v252_v31  ;;  %333 = vst.msk [vmem:[%s1392_s4 + $0x158] sm:$0xff] %vm289_vm1, %v268_v32  ;;  %v365_v42 = vadd.f32 %v252_v31, %v236_v26  ;;  %v197_v43 = vadd.f32 %v745_v9, %v126_v33  ;;  %v41_v28 = vld [vmem:[%s1389_s0 + $0xb0] sm:$0xff] }
  0x28   :  { %v102_v44 = vmul.f32 %v737_v5, %v31_v29  ;;  %349 = vst.msk [vmem:[%s1392_s4 + $0x1d8] sm:$0xff] %vm289_vm1, %v284_v35  ;;  %v213_v45 = vadd.f32 %v745_v9, %v142_v36  ;;  %v229_v46 = vmax.f32 %v165_v37, 0.0  ;;  %v245_v47 = vmax.f32 %v181_v38, 0.0  ;;  %v57_v33 = vld [vmem:[%s1389_s0 + $0x130] sm:$0xff] }
  0x29   :  { %v118_v48 = vmul.f32 %v737_v5, %v47_v34  ;;  %667 = vmatmul.mubr.msk.f32.gmra.mxu0 %vm289_vm1, %v389_v41  ;;  %v381_v50 = vadd.f32 %v365_v42, %v268_v32  ;;  %v261_v51 = vmax.f32 %v197_v43, 0.0  ;;  %v134_v52 = vmul.f32 %v737_v5, %v63_v39  ;;  %v73_v38 = vld [vmem:[%s1389_s0 + $0x1b0] sm:$0xff] }
  0x2a   :  { %v150_v53 = vmul.f32 %v737_v5, %v79_v40  ;;  %v277_v55 = vmax.f32 %v213_v45, 0.0  ;;  %294 = vst.msk [vmem:[%s1392_s4 + $0x20] sm:$0xff] %vm289_vm1, %v229_v46  ;;  %310 = vst.msk [vmem:[%s1392_s4 + $0xa0] sm:$0xff] %vm289_vm1, %v245_v47  ;;  %v358_v56 = vadd.f32 %v245_v47, %v229_v46  ;;  %v173_v57 = vadd.f32 %v745_v9, %v102_v44  ;;  %v33_v43 = vld [vmem:[%s1389_s0 + $0x70] sm:$0xff] }
  0x2b   :  { %v189_v58 = vadd.f32 %v745_v9, %v118_v48  ;;  %v397_v61 = vadd.f32 %v381_v50, %v284_v35  ;;  %326 = vst.msk [vmem:[%s1392_s4 + $0x120] sm:$0xff] %vm289_vm1, %v261_v51  ;;  %v205_v62 = vadd.f32 %v745_v9, %v134_v52  ;;  %v95_v0 = vmul.f32 %v737_v5, %v24_v49  ;;  %v49_v48 = vld [vmem:[%s1389_s0 + $0xf0] sm:$0xff] }
  0x2c   :  { %v221_v63 = vadd.f32 %v745_v9, %v150_v53  ;;  %342 = vst.msk [vmem:[%s1392_s4 + $0x1a0] sm:$0xff] %vm289_vm1, %v277_v55  ;;  %v374_v1 = vadd.f32 %v358_v56, %v261_v51  ;;  %v237_v2 = vmax.f32 %v173_v57, 0.0  ;;  %v111_v4 = vmul.f32 %v737_v5, %v40_v54  ;;  %v65_v53 = vld [vmem:[%s1389_s0 + $0x170] sm:$0xff] }
  0x2d   :  { %v253_v3 = vmax.f32 %v189_v58, 0.0  ;;  %679 = vmatmul.mubr.msk.f32.gmra.mxu1 %vm289_vm1, %v397_v61  ;;  %v269_v8 = vmax.f32 %v205_v62, 0.0  ;;  %v127_v11 = vmul.f32 %v737_v5, %v56_v59  ;;  %v143_v12 = vmul.f32 %v737_v5, %v72_v60  ;;  %v81_v54 = vld [vmem:[%s1389_s0 + $0x1f0] sm:$0xff] }
  0x2e   :  { %v285_v10 = vmax.f32 %v221_v63, 0.0  ;;  %v390_v14 = vadd.f32 %v374_v1, %v277_v55  ;;  %302 = vst.msk [vmem:[%s1392_s4 + $0x60] sm:$0xff] %vm289_vm1, %v237_v2  ;;  %v166_v16 = vadd.f32 %v745_v9, %v95_v0  ;;  %v182_v17 = vadd.f32 %v745_v9, %v111_v4  ;;  %v26_v63 = vld [vmem:[%s1389_s0 + $0x38] sm:$0xff] }
  0x2f   :  { %318 = vst.msk [vmem:[%s1392_s4 + $0xe0] sm:$0xff] %vm289_vm1, %v253_v3  ;;  %v366_v15 = vadd.f32 %v253_v3, %v237_v2  ;;  %334 = vst.msk [vmem:[%s1392_s4 + $0x160] sm:$0xff] %vm289_vm1, %v269_v8  ;;  %v198_v19 = vadd.f32 %v745_v9, %v127_v11  ;;  %v214_v20 = vadd.f32 %v745_v9, %v143_v12  ;;  %v42_v4 = vld [vmem:[%s1389_s0 + $0xb8] sm:$0xff] }
  0x30   :  { %350 = vst.msk [vmem:[%s1392_s4 + $0x1e0] sm:$0xff] %vm289_vm1, %v285_v10  ;;  %v103_v21 = vmul.f32 %v737_v5, %v32_v6  ;;  %v119_v22 = vmul.f32 %v737_v5, %v48_v7  ;;  %669 = vmatprep.mubr.msk.f32.mxu0 %vm289_vm1, %v390_v14  ;;  %v230_v24 = vmax.f32 %v166_v16, 0.0  ;;  %v246_v25 = vmax.f32 %v182_v17, 0.0  ;;  %v58_v11 = vld [vmem:[%s1389_s0 + $0x138] sm:$0xff] }
  0x31   :  { %v382_v23 = vadd.f32 %v366_v15, %v269_v8  ;;  %v135_v26 = vmul.f32 %v737_v5, %v64_v13  ;;  %v262_v29 = vmax.f32 %v198_v19, 0.0  ;;  %v278_v30 = vmax.f32 %v214_v20, 0.0  ;;  %v74_v12 = vld [vmem:[%s1389_s0 + $0x1b8] sm:$0xff] }
  0x32   :  { %v151_v31 = vmul.f32 %v737_v5, %v80_v18  ;;  %v174_v32 = vadd.f32 %v745_v9, %v103_v21  ;;  %295 = vst.msk [vmem:[%s1392_s4 + $0x28] sm:$0xff] %vm289_vm1, %v230_v24  ;;  %311 = vst.msk [vmem:[%s1392_s4 + $0xa8] sm:$0xff] %vm289_vm1, %v246_v25  ;;  %v359_v35 = vadd.f32 %v246_v25, %v230_v24  ;;  %v34_v21 = vld [vmem:[%s1389_s0 + $0x78] sm:$0xff] }
  0x33   :  { %v398_v34 = vadd.f32 %v382_v23, %v285_v10  ;;  %v190_v36 = vadd.f32 %v745_v9, %v119_v22  ;;  %v206_v37 = vadd.f32 %v745_v9, %v135_v26  ;;  %327 = vst.msk [vmem:[%s1392_s4 + $0x128] sm:$0xff] %vm289_vm1, %v262_v29  ;;  %343 = vst.msk [vmem:[%s1392_s4 + $0x1a8] sm:$0xff] %vm289_vm1, %v278_v30  ;;  %v50_v22 = vld [vmem:[%s1389_s0 + $0xf8] sm:$0xff] }
  0x34   :  { %v222_v39 = vadd.f32 %v745_v9, %v151_v31  ;;  %v238_v40 = vmax.f32 %v174_v32, 0.0  ;;  %v96_v41 = vmul.f32 %v737_v5, %v25_v27  ;;  %v112_v42 = vmul.f32 %v737_v5, %v41_v28  ;;  %v66_v27 = vld [vmem:[%s1389_s0 + $0x178] sm:$0xff] }
  0x35   :  { %681 = vmatprep.mubr.msk.f32.mxu1 %vm289_vm1, %v398_v34  ;;  %v375_v44 = vadd.f32 %v359_v35, %v262_v29  ;;  %v254_v45 = vmax.f32 %v190_v36, 0.0  ;;  %v270_v46 = vmax.f32 %v206_v37, 0.0  ;;  %v128_v47 = vmul.f32 %v737_v5, %v57_v33  ;;  %v82_v32 = vld [vmem:[%s1389_s0 + $0x1f8] sm:$0xff] }
  0x36   :  { %v286_v49 = vmax.f32 %v222_v39, 0.0  ;;  %303 = vst.msk [vmem:[%s1392_s4 + $0x68] sm:$0xff] %vm289_vm1, %v238_v40  ;;  %v144_v50 = vmul.f32 %v737_v5, %v73_v38  ;;  %v167_v51 = vadd.f32 %v745_v9, %v96_v41  ;;  %v183_v52 = vadd.f32 %v745_v9, %v112_v42 }
  0x37   :  { %v391_v55 = vadd.f32 %v375_v44, %v278_v30  ;;  %319 = vst.msk [vmem:[%s1392_s4 + $0xe8] sm:$0xff] %vm289_vm1, %v254_v45  ;;  %335 = vst.msk [vmem:[%s1392_s4 + $0x168] sm:$0xff] %vm289_vm1, %v270_v46  ;;  %v367_v56 = vadd.f32 %v254_v45, %v238_v40  ;;  %v199_v57 = vadd.f32 %v745_v9, %v128_v47 }
  0x38   :  { %v104_v58 = vmul.f32 %v737_v5, %v33_v43  ;;  %351 = vst.msk [vmem:[%s1392_s4 + $0x1e8] sm:$0xff] %vm289_vm1, %v286_v49  ;;  %v215_v59 = vadd.f32 %v745_v9, %v144_v50  ;;  %v231_v60 = vmax.f32 %v167_v51, 0.0  ;;  %v247_v61 = vmax.f32 %v183_v52, 0.0 }
  0x39   :  { %v120_v62 = vmul.f32 %v737_v5, %v49_v48  ;;  %670 = vmatmul.mubr.msk.f32.gmra.mxu0 %vm289_vm1, %v391_v55  ;;  %v383_v0 = vadd.f32 %v367_v56, %v270_v46  ;;  %v263_v1 = vmax.f32 %v199_v57, 0.0  ;;  %v136_v2 = vmul.f32 %v737_v5, %v65_v53 }
  0x3a   :  { %v152_v3 = vmul.f32 %v737_v5, %v81_v54  ;;  %v279_v6 = vmax.f32 %v215_v59, 0.0  ;;  %296 = vst.msk [vmem:[%s1392_s4 + $0x30] sm:$0xff] %vm289_vm1, %v231_v60  ;;  %312 = vst.msk [vmem:[%s1392_s4 + $0xb0] sm:$0xff] %vm289_vm1, %v247_v61  ;;  %v360_v7 = vadd.f32 %v247_v61, %v231_v60  ;;  %v175_v8 = vadd.f32 %v745_v9, %v104_v58 }
  0x3b   :  { %v191_v10 = vadd.f32 %v745_v9, %v120_v62  ;;  %v399_v13 = vadd.f32 %v383_v0, %v286_v49  ;;  %328 = vst.msk [vmem:[%s1392_s4 + $0x130] sm:$0xff] %vm289_vm1, %v263_v1  ;;  %v207_v14 = vadd.f32 %v745_v9, %v136_v2  ;;  %v97_v16 = vmul.f32 %v737_v5, %v26_v63 }
  0x3c   :  { %v223_v15 = vadd.f32 %v745_v9, %v152_v3  ;;  %344 = vst.msk [vmem:[%s1392_s4 + $0x1b0] sm:$0xff] %vm289_vm1, %v279_v6  ;;  %v376_v17 = vadd.f32 %v360_v7, %v263_v1  ;;  %v239_v18 = vmax.f32 %v175_v8, 0.0  ;;  %v113_v20 = vmul.f32 %v737_v5, %v42_v4 }
  0x3d   :  { %v255_v19 = vmax.f32 %v191_v10, 0.0  ;;  %682 = vmatmul.mubr.msk.f32.gmra.mxu1 %vm289_vm1, %v399_v13  ;;  %v271_v23 = vmax.f32 %v207_v14, 0.0  ;;  %v129_v25 = vmul.f32 %v737_v5, %v58_v11  ;;  %v145_v26 = vmul.f32 %v737_v5, %v74_v12 }
  0x3e   :  { %v287_v24 = vmax.f32 %v223_v15, 0.0  ;;  %v392_v28 = vadd.f32 %v376_v17, %v279_v6  ;;  %304 = vst.msk [vmem:[%s1392_s4 + $0x70] sm:$0xff] %vm289_vm1, %v239_v18  ;;  %v168_v30 = vadd.f32 %v745_v9, %v97_v16  ;;  %v184_v31 = vadd.f32 %v745_v9, %v113_v20 }
  0x3f   :  { %320 = vst.msk [vmem:[%s1392_s4 + $0xf0] sm:$0xff] %vm289_vm1, %v255_v19  ;;  %v368_v29 = vadd.f32 %v255_v19, %v239_v18  ;;  %336 = vst.msk [vmem:[%s1392_s4 + $0x170] sm:$0xff] %vm289_vm1, %v271_v23  ;;  %v200_v33 = vadd.f32 %v745_v9, %v129_v25  ;;  %v216_v34 = vadd.f32 %v745_v9, %v145_v26 }
  0x40   :  { %352 = vst.msk [vmem:[%s1392_s4 + $0x1f0] sm:$0xff] %vm289_vm1, %v287_v24  ;;  %v105_v35 = vmul.f32 %v737_v5, %v34_v21  ;;  %v121_v36 = vmul.f32 %v737_v5, %v50_v22  ;;  %672 = vmatprep.mubr.msk.f32.mxu0 %vm289_vm1, %v392_v28  ;;  %v232_v38 = vmax.f32 %v168_v30, 0.0  ;;  %v248_v39 = vmax.f32 %v184_v31, 0.0 }
  0x41   :  { %v384_v37 = vadd.f32 %v368_v29, %v271_v23  ;;  %v137_v40 = vmul.f32 %v737_v5, %v66_v27  ;;  %v264_v41 = vmax.f32 %v200_v33, 0.0  ;;  %v280_v42 = vmax.f32 %v216_v34, 0.0 }
  0x42   :  { %v153_v43 = vmul.f32 %v737_v5, %v82_v32  ;;  %v176_v44 = vadd.f32 %v745_v9, %v105_v35  ;;  %297 = vst.msk [vmem:[%s1392_s4 + $0x38] sm:$0xff] %vm289_vm1, %v232_v38  ;;  %313 = vst.msk [vmem:[%s1392_s4 + $0xb8] sm:$0xff] %vm289_vm1, %v248_v39  ;;  %v361_v46 = vadd.f32 %v248_v39, %v232_v38 }
  0x43   :  { %v400_v45 = vadd.f32 %v384_v37, %v287_v24  ;;  %v192_v47 = vadd.f32 %v745_v9, %v121_v36  ;;  %v208_v48 = vadd.f32 %v745_v9, %v137_v40  ;;  %329 = vst.msk [vmem:[%s1392_s4 + $0x138] sm:$0xff] %vm289_vm1, %v264_v41  ;;  %345 = vst.msk [vmem:[%s1392_s4 + $0x1b8] sm:$0xff] %vm289_vm1, %v280_v42 }
  0x44   :  { %v224_v5 = vadd.f32 %v745_v9, %v153_v43  ;;  %v240_v49 = vmax.f32 %v176_v44, 0.0  ;;  %v377_v50 = vadd.f32 %v361_v46, %v264_v41 }
  0x45   :  { %684 = vmatprep.mubr.msk.f32.mxu1 %vm289_vm1, %v400_v45  ;;  %v256_v51 = vmax.f32 %v192_v47, 0.0  ;;  %v272_v52 = vmax.f32 %v208_v48, 0.0 }
  0x46   :  { %v288_v53 = vmax.f32 %v224_v5, 0.0  ;;  %305 = vst.msk [vmem:[%s1392_s4 + $0x78] sm:$0xff] %vm289_vm1, %v240_v49  ;;  %v393_v54 = vadd.f32 %v377_v50, %v280_v42 }
  0x47   :  { %321 = vst.msk [vmem:[%s1392_s4 + $0xf8] sm:$0xff] %vm289_vm1, %v256_v51  ;;  %337 = vst.msk [vmem:[%s1392_s4 + $0x178] sm:$0xff] %vm289_vm1, %v272_v52  ;;  %v369_v9 = vadd.f32 %v256_v51, %v240_v49 }
  0x48   :  { %353 = vst.msk [vmem:[%s1392_s4 + $0x1f8] sm:$0xff] %vm289_vm1, %v288_v53  ;;  %673 = vmatmul.mubr.msk.f32.gmra.mxu0 %vm289_vm1, %v393_v54 }
  0x49   :  { %v385_v55 = vadd.f32 %v369_v9, %v272_v52 }
  0x4b   :  { %v401_v56 = vadd.f32 %v385_v55, %v288_v53 }
  0x4d   :  { %685 = vmatmul.mubr.msk.f32.gmra.mxu1 %vm289_vm1, %v401_v56 }
  0xd9   :  { %v665_v57 = vpop.f32.mrf.mxu0 }
  0xda   :  { %602 = vst.msk [vmem:[%s1393_s5 + $0x8] sm:$0xff] %vm600_vm2, %v665_v57 }
  0xdb   :  { %v521_v58 = vpop.f32.mrf.mxu0 }
  0xdc   :  { %601 = vst.msk [vmem:[%s1393_s5] sm:$0xff] %vm600_vm2, %v521_v58 }
  0xdd   :  { %v677_v59 = vpop.f32.mrf.mxu1 }
  0xde   :  { %610 = vst.msk [vmem:[%s1393_s5 + $0x48] sm:$0xff] %vm600_vm2, %v677_v59 }
  0xdf   :  { %v561_v60 = vpop.f32.mrf.mxu1 }
  0xe0   :  { %609 = vst.msk [vmem:[%s1393_s5 + $0x40] sm:$0xff] %vm600_vm2, %v561_v60 }
  0xe9   :  { %v668_v61 = vpop.f32.mrf.mxu0 }
  0xea   :  { %604 = vst.msk [vmem:[%s1393_s5 + $0x18] sm:$0xff] %vm600_vm2, %v668_v61 }
  0xeb   :  { %v531_v62 = vpop.f32.mrf.mxu0 }
  0xec   :  { %603 = vst.msk [vmem:[%s1393_s5 + $0x10] sm:$0xff] %vm600_vm2, %v531_v62 }
  0xed   :  { %v680_v63 = vpop.f32.mrf.mxu1 }
  0xee   :  { %612 = vst.msk [vmem:[%s1393_s5 + $0x58] sm:$0xff] %vm600_vm2, %v680_v63 }
  0xef   :  { %v571_v0 = vpop.f32.mrf.mxu1 }
  0xf0   :  { %611 = vst.msk [vmem:[%s1393_s5 + $0x50] sm:$0xff] %vm600_vm2, %v571_v0 }
  0xf9   :  { %v671_v1 = vpop.f32.mrf.mxu0 }
  0xfa   :  { %606 = vst.msk [vmem:[%s1393_s5 + $0x28] sm:$0xff] %vm600_vm2, %v671_v1 }
  0xfb   :  { %v541_v2 = vpop.f32.mrf.mxu0 }
  0xfc   :  { %605 = vst.msk [vmem:[%s1393_s5 + $0x20] sm:$0xff] %vm600_vm2, %v541_v2 }
  0xfd   :  { %v683_v3 = vpop.f32.mrf.mxu1 }
  0xfe   :  { %614 = vst.msk [vmem:[%s1393_s5 + $0x68] sm:$0xff] %vm600_vm2, %v683_v3 }
  0xff   :  { %v581_v4 = vpop.f32.mrf.mxu1 }
 0x100   :  { %613 = vst.msk [vmem:[%s1393_s5 + $0x60] sm:$0xff] %vm600_vm2, %v581_v4 }
 0x108   :  { %v674_v6 = vpop.f32.mrf.mxu0 }
 0x109   :  { %608 = vst.msk [vmem:[%s1393_s5 + $0x38] sm:$0xff] %vm600_vm2, %v674_v6 }
 0x10a   :  { %v551_v7 = vpop.f32.mrf.mxu0 }
 0x10b   :  { %607 = vst.msk [vmem:[%s1393_s5 + $0x30] sm:$0xff] %vm600_vm2, %v551_v7 }
 0x10d   :  { %v686_v8 = vpop.f32.mrf.mxu1 }
 0x10e   :  { %616 = vst.msk [vmem:[%s1393_s5 + $0x78] sm:$0xff] %vm600_vm2, %v686_v8 }
 0x10f   :  { %v591_v10 = vpop.f32.mrf.mxu1 }
 0x110   :  { %615 = vst.msk [vmem:[%s1393_s5 + $0x70] sm:$0xff] %vm600_vm2, %v591_v10 }

</bundles_post_ra>
